<compile_context>
chip_gen: v6e
topology: v6e:2x2x1
jax: 0.10.0
libtpu: 0.0.40
codegen_flags: <defaults>
</compile_context>

<pallas_src>
import functools

import jax
import jax.numpy as jnp
from jax import lax
from jax.experimental import pallas as pl
from jax.experimental.pallas import tpu as pltpu

_MIB = 1024 * 1024


# ----------------------------------------------------------------------------
# Fused kernel: attention -> bilinear weights + separable resample
# ----------------------------------------------------------------------------
def _att_sampler_kernel(attx_ref, atty_ref, data_ref, out_ref, *,
                        out_size, dense, iters, compute_dtype):
    S = attx_ref.shape[-1]                    # attention length == in_size
    TC = data_ref.shape[1]                    # channels in this tile
    H = data_ref.shape[2]
    W = data_ref.shape[3]
    S_f = jnp.float32(S)
    out_f = jnp.float32(out_size)

    # ---- phase 1: attention marginals -> dense bilinear weights ------------
    # Recomputed every grid step (cheap VPU/EUP/XLU work that co-issues under
    # the data DMA and MXU matmuls).  No scratch carry => both grid axes can be
    # 'parallel' (v7x megacore shards the channel axis even at N == 1).
    ax = attx_ref[0].astype(jnp.float32)              # (1, S)
    ay = atty_ref[0].astype(jnp.float32)              # (1, S)
    a2 = jnp.concatenate([ax, ay], axis=0)            # (2, S) row0=x row1=y
    # normalise each marginal so it sums to out_size
    a2 = a2 * (out_f / jnp.sum(a2, axis=1, keepdims=True))

    thr = jnp.full((1, 1), float(dense) * S / out_size, jnp.float32)
    for j in range(iters):                            # static -> unrolled
        # joint threshold: min over the two marginals of their maxima
        m = jnp.min(jnp.max(a2, axis=1, keepdims=True), axis=0, keepdims=True)
        thr = jnp.minimum(m, thr) if j == 0 else m
        a2 = jnp.minimum(a2, thr)
        # redistribute the clipped mass uniformly
        a2 = a2 + (out_f - jnp.sum(a2, axis=1, keepdims=True)) / S_f

    # exclusive cumsum (left CDF edges) of both rows: exact-f32 log-step
    # shift-and-add prefix sum along lanes (no SxS tril input, no MXU).
    inc = a2
    sh = 1
    while sh < S:                                     # static -> unrolled
        shifted = jnp.concatenate(
            [jnp.zeros((2, sh), jnp.float32), inc[:, :S - sh]], axis=1)
        inc = inc + shifted
        sh *= 2
    cum_left = inc - a2                               # (2, S)

    cols = lax.broadcasted_iota(jnp.int32, (1, S), 1).astype(jnp.float32)
    krow = lax.broadcasted_iota(jnp.int32, (out_size, 1), 0).astype(jnp.float32)
    px_scale = jnp.float32((S - 1) / S)               # pos -> pixel coord

    def axis_weights(a, cum):                         # a, cum: (1, S)
        # EUP approximate reciprocal co-issues for free; frac is clipped to
        # [0, 1] so the approximation error stays well below tolerance.
        inv_a = pl.reciprocal(jnp.maximum(a, 1e-12), approx=True)   # (1, S)
        step = jnp.sum(a, axis=1, keepdims=True) / out_f            # (1, 1)
        target = (krow + 1.0) * step                                # (out, 1)
        # inverse CDF via clipped-fraction counting:
        #   pos_k = sum_m clip((target_k - cum_m) * inv_a_m, 0, 1)
        frac = jnp.clip((target - cum) * inv_a, 0.0, 1.0)           # (out, S)
        # redundant clamp (each frac <= 1, S terms) kept as a documented guard
        pos = jnp.minimum(jnp.sum(frac, axis=1, keepdims=True), S_f)
        ix = pos * px_scale                                         # (out, 1)
        # dense bilinear ("tent") weights; coords stay inside [0, S-1]
        return jnp.maximum(0.0, 1.0 - jnp.abs(ix - cols))           # (out, S)

    wx = axis_weights(a2[0:1], cum_left[0:1]).astype(compute_dtype)  # (oW, W)
    wy = axis_weights(a2[1:2], cum_left[1:2]).astype(compute_dtype)  # (oH, H)

    # ---- phase 2: separable bilinear resample on the MXU --------------------
    # One big matmul (M = TC*H) for the W-contraction, then one (oH,H)@(H,oW)
    # matmul per channel for the H-contraction (no wy replication, no
    # relayout transposes; result is cast and stored per channel to keep peak
    # VMEM low).
    d2 = data_ref[0].reshape(TC * H, W).astype(compute_dtype)        # (TC*H, W)
    v = lax.dot_general(d2, wx, (((1,), (1,)), ((), ())),
                        preferred_element_type=jnp.float32)          # (TC*H,oW)
    v = v.reshape(TC, H, out_size).astype(compute_dtype)             # (TC,H,oW)

    for c in range(TC):                                # static -> unrolled
        o_c = lax.dot_general(wy, v[c], (((1,), (0,)), ((), ())),
                              preferred_element_type=jnp.float32)    # (oH, oW)
        out_ref[0, c] = o_c.astype(out_ref.dtype)


# ----------------------------------------------------------------------------
# Channel-tile selection (prefer exact divisors of C; pad only as a fallback)
# ----------------------------------------------------------------------------
def _choose_channel_tile(C, c_cap, H):
    c_cap = max(1, min(C, int(c_cap)))
    divisors = [d for d in range(1, c_cap + 1) if C % d == 0]
    best = max(divisors)
    # prefer MXU-friendly tiles (c*H multiple of 256) if it costs < 2x
    aligned = [d for d in divisors if (d * H) % 256 == 0]
    if aligned and 2 * max(aligned) >= best:
        best = max(aligned)
    if 2 * best >= c_cap:
        return best, C                       # exact tiling, no padding
    c_padded = -(-C // c_cap) * c_cap        # pad channels instead of c_tile=1
    return c_cap, c_padded


# ----------------------------------------------------------------------------
# Wrapper
# ----------------------------------------------------------------------------
def att_sampler(data, attx, atty, *, scale=1.0, dense=4, iters=5,
                compute_dtype=None):
    N, C, H, W = data.shape
    assert H == W, "AttSamplerGrid assumes square spatial input"
    assert H % 8 == 0, "in_size must be a multiple of 8 (free C*H sublane merge)"
    in_size = H
    S = attx.shape[1]
    assert S == in_size and atty.shape[1] == in_size
    out_size = int(in_size * scale)

    ax = attx.reshape(N, 1, S).astype(jnp.float32)
    ay = atty.reshape(N, 1, S).astype(jnp.float32)

    if compute_dtype is None:
        # keep f32 parity with grid_sample unless the caller is already bf16;
        # pass compute_dtype=jnp.bfloat16 explicitly for the fast MXU path.
        compute_dtype = (jnp.bfloat16 if data.dtype == jnp.bfloat16
                         else jnp.float32)

    # ---- generation-aware VMEM sizing ---------------------------------------
    try:
        vmem_cap = int(pltpu.get_tpu_info().vmem_capacity_bytes)
    except Exception:
        vmem_cap = 64 * _MIB
    if vmem_cap >= 96 * _MIB:          # v5e / v6e: 128 MiB per core
        tile_budget, limit_cap = 56 * _MIB, 96 * _MIB
    else:                              # v7x: 64 MiB per core, leave headroom
        tile_budget, limit_cap = 16 * _MIB, 40 * _MIB

    in_item = jnp.dtype(data.dtype).itemsize
    cdt_item = jnp.dtype(compute_dtype).itemsize
    per_c = (2 * H * W * in_item                      # data block (x2 buffers)
             + 2 * out_size * out_size * in_item      # out block (x2 buffers)
             + H * W * cdt_item                       # d2 cast/reshape copy
             + H * out_size * (4 + cdt_item))         # v (f32 acc + cast copy)
    fixed = (2 * 2 * S * 4 * 2                        # attx/atty blocks
             + 2 * out_size * S * (4 + cdt_item)      # wx / wy (+ cast copies)
             + 2 * out_size * S * 4                   # frac / tent temporaries
             + out_size * out_size * 4                # per-channel f32 result
             + 2 * _MIB)                              # Mosaic internal slack
    c_cap = max(1, (tile_budget - fixed) // per_c)
    c_tile, c_padded = _choose_channel_tile(C, c_cap, H)
    c_steps = c_padded // c_tile

    data_in = data
    if c_padded != C:
        data_in = jnp.pad(data, ((0, 0), (0, c_padded - C), (0, 0), (0, 0)))

    vmem_limit = int(min(limit_cap,
                         max(16 * _MIB, int(1.5 * (per_c * c_tile + fixed)))))

    kernel = functools.partial(_att_sampler_kernel, out_size=out_size,
                               dense=dense, iters=iters,
                               compute_dtype=compute_dtype)

    out = pl.pallas_call(
        kernel,
        out_shape=jax.ShapeDtypeStruct((N, c_padded, out_size, out_size),
                                       data.dtype),
        grid_spec=pltpu.PrefetchScalarGridSpec(
            num_scalar_prefetch=0,
            grid=(N, c_steps),
            in_specs=[
                pl.BlockSpec((1, 1, S), lambda n, c: (n, 0, 0)),   # attx
                pl.BlockSpec((1, 1, S), lambda n, c: (n, 0, 0)),   # atty
                pl.BlockSpec((1, c_tile, H, W),
                             lambda n, c: (n, c, 0, 0)),           # data tile
            ],
            out_specs=pl.BlockSpec((1, c_tile, out_size, out_size),
                                   lambda n, c: (n, c, 0, 0))),
        compiler_params=pltpu.CompilerParams(
            dimension_semantics=("parallel", "parallel"),
            vmem_limit_bytes=vmem_limit),
    )(ax, ay, data_in)

    if c_padded != C:
        out = out[:, :C]
    return out


# ----------------------------------------------------------------------------
# Pure-JAX reference (same math) for a correctness check
# ----------------------------------------------------------------------------
def att_sampler_ref(data, attx, atty, *, scale=1.0, dense=4, iters=5):
    N, C, H, W = data.shape
    S = attx.shape[1]
    out_size = int(H * scale)
    ax = attx.reshape(N, S).astype(jnp.float32)
    ay = atty.reshape(N, S).astype(jnp.float32)
    ax = ax * out_size / ax.sum(1, keepdims=True)
    ay = ay * out_size / ay.sum(1, keepdims=True)
    thr = jnp.full((N, 1), float(dense) * S / out_size, jnp.float32)
    for j in range(iters):
        m = jnp.minimum(ax.max(1, keepdims=True), ay.max(1, keepdims=True))
        thr = jnp.minimum(m, thr) if j == 0 else m
        ax = jnp.minimum(ax, thr)
        ay = jnp.minimum(ay, thr)
        ax = ax + (out_size - ax.sum(1, keepdims=True)) / S
        ay = ay + (out_size - ay.sum(1, keepdims=True)) / S

    def coords(a):
        cum = jnp.cumsum(a, axis=1)
        step = cum[:, -1:] / out_size
        target = (jnp.arange(out_size, dtype=jnp.float32)[None] + 1.0) * step
        cum_left = cum - a
        frac = (target[:, :, None] - cum_left[:, None, :]) / jnp.maximum(
            a[:, None, :], 1e-12)
        pos = jnp.clip(frac, 0.0, 1.0).sum(-1)           # (N, out)
        return pos * (H - 1) / S                          # pixel coords

    ix, iy = coords(ax), coords(ay)
    colw = jnp.arange(W, dtype=jnp.float32)
    colh = jnp.arange(H, dtype=jnp.float32)
    wx = jnp.maximum(0.0, 1.0 - jnp.abs(ix[:, :, None] - colw))   # (N,out,W)
    wy = jnp.maximum(0.0, 1.0 - jnp.abs(iy[:, :, None] - colh))   # (N,out,H)
    t = jnp.einsum('noh,nchw->ncow', wy, data.astype(jnp.float32))
    o = jnp.einsum('ncow,npw->ncop', t, wx)
    return o.astype(data.dtype)


if __name__ == "__main__":
    key = jax.random.PRNGKey(0)
    k1, k2, k3 = jax.random.split(key, 3)
    N, C, H, W = 2, 4, 16, 16
    data = jax.random.normal(k1, (N, C, H, W), jnp.float32)
    # positive attention marginals, shapes as in the PyTorch module
    attx = jax.nn.softplus(jax.random.normal(k2, (N, W, 1), jnp.float32)) + 1e-3
    atty = jax.nn.softplus(jax.random.normal(k3, (N, H, 1), jnp.float32)) + 1e-3

    # f32 path, scale = 1.0
    out = jax.block_until_ready(att_sampler(data, attx, atty, scale=1.0))
    ref = att_sampler_ref(data, attx, atty, scale=1.0)
    assert out.shape == (N, C, 16, 16)
    err = float(jnp.max(jnp.abs(out - ref)))
    # 5e-3 tolerance covers the EUP approximate reciprocal in the inverse CDF
    assert jnp.allclose(out, ref, atol=5e-3, rtol=5e-3), f"f32 max abs err {err}"

    # f32 path, scale = 0.5 (out_size != in_size)
    out_h = jax.block_until_ready(att_sampler(data, attx, atty, scale=0.5))
    ref_h = att_sampler_ref(data, attx, atty, scale=0.5)
    assert out_h.shape == (N, C, 8, 8)
    err_h = float(jnp.max(jnp.abs(out_h - ref_h)))
    assert jnp.allclose(out_h, ref_h, atol=5e-3, rtol=5e-3), \
        f"scale=0.5 max abs err {err_h}"

    # bf16 fast-MXU path (v6e/v7x recommendation), looser tolerance
    out_bf = jax.block_until_ready(
        att_sampler(data, attx, atty, scale=1.0, compute_dtype=jnp.bfloat16))
    err_bf = float(jnp.max(jnp.abs(out_bf - ref)))
    assert jnp.allclose(out_bf, ref, atol=5e-2, rtol=5e-2), \
        f"bf16 max abs err {err_bf}"

    print("KERNEL_OK")
</pallas_src>

<mosaic_0001>
module attributes {stable_mosaic.version = 11 : i64} {
  func.func @_att_sampler_kernel(%arg0: i32, %arg1: i32, %arg2: memref<1x1x16xf32, #tpu.memory_space<vmem>>, %arg3: memref<1x1x16xf32, #tpu.memory_space<vmem>>, %arg4: memref<1x4x16x16xf32, #tpu.memory_space<vmem>>, %arg5: memref<1x4x16x16xf32, #tpu.memory_space<vmem>>) attributes {dimension_semantics = [#tpu.dimension_semantics<parallel>, #tpu.dimension_semantics<parallel>], iteration_bounds = array<i64: 2, 1>, scalar_prefetch = 0 : i64, scratch_operands = 0 : i64, tpu.core_type = #tpu.core_type<tc>, window_params = [{transform_indices = @transform_0, window_bounds = array<i64: 1, 1, 16>}, {transform_indices = @transform_1, window_bounds = array<i64: 1, 1, 16>}, {transform_indices = @transform_2, window_bounds = array<i64: 1, 4, 16, 16>}, {transform_indices = @transform_3, window_bounds = array<i64: 1, 4, 16, 16>}]} {
    %c0 = arith.constant 0 : index
    %c0_0 = arith.constant 0 : index
    %c0_1 = arith.constant 0 : index
    %0 = vector.load %arg2[%c0, %c0_0, %c0_1] : memref<1x1x16xf32, #tpu.memory_space<vmem>>, vector<1x1x16xf32>
    %1 = vector.shape_cast %0 : vector<1x1x16xf32> to vector<1x16xf32>
    %c0_2 = arith.constant 0 : index
    %c0_3 = arith.constant 0 : index
    %c0_4 = arith.constant 0 : index
    %2 = vector.load %arg3[%c0_2, %c0_3, %c0_4] : memref<1x1x16xf32, #tpu.memory_space<vmem>>, vector<1x1x16xf32>
    %3 = vector.shape_cast %2 : vector<1x1x16xf32> to vector<1x16xf32>
    %4 = tpu.concatenate %1, %3 in 0 : vector<1x16xf32>, vector<1x16xf32> -> vector<2x16xf32>
    %cst = arith.constant dense<0.000000e+00> : vector<2xf32>
    %5 = vector.multi_reduction <add>, %4, %cst [1] : vector<2x16xf32> to vector<2xf32>
    %6 = vector.shape_cast %5 : vector<2xf32> to vector<2x1xf32>
    %cst_5 = arith.constant 1.600000e+01 : f32
    %7 = vector.broadcast %cst_5 : f32 to vector<2x1xf32>
    %8 = arith.divf %7, %6 : vector<2x1xf32>
    %9 = vector.broadcast %8 : vector<2x1xf32> to vector<2x16xf32>
    %10 = arith.mulf %4, %9 : vector<2x16xf32>
    %cst_6 = arith.constant 4.000000e+00 : f32
    %11 = vector.broadcast %cst_6 : f32 to vector<1x1xf32>
    %cst_7 = arith.constant dense<0xFF800000> : vector<2xf32>
    %12 = vector.multi_reduction <maximumf>, %10, %cst_7 [1] : vector<2x16xf32> to vector<2xf32>
    %13 = vector.shape_cast %12 : vector<2xf32> to vector<2x1xf32>
    %cst_8 = arith.constant dense<0x7F800000> : vector<1xf32>
    %14 = vector.multi_reduction <minimumf>, %13, %cst_8 [0] : vector<2x1xf32> to vector<1xf32>
    %15 = vector.shape_cast %14 : vector<1xf32> to vector<1x1xf32>
    %16 = arith.minimumf %15, %11 : vector<1x1xf32>
    %17 = vector.broadcast %16 : vector<1x1xf32> to vector<2x16xf32>
    %18 = arith.minimumf %10, %17 : vector<2x16xf32>
    %cst_9 = arith.constant dense<0.000000e+00> : vector<2xf32>
    %19 = vector.multi_reduction <add>, %18, %cst_9 [1] : vector<2x16xf32> to vector<2xf32>
    %20 = vector.shape_cast %19 : vector<2xf32> to vector<2x1xf32>
    %cst_10 = arith.constant 1.600000e+01 : f32
    %21 = vector.broadcast %cst_10 : f32 to vector<2x1xf32>
    %22 = arith.subf %21, %20 : vector<2x1xf32>
    %cst_11 = arith.constant 1.600000e+01 : f32
    %23 = vector.broadcast %cst_11 : f32 to vector<2x1xf32>
    %24 = arith.divf %22, %23 : vector<2x1xf32>
    %25 = vector.broadcast %24 : vector<2x1xf32> to vector<2x16xf32>
    %26 = arith.addf %18, %25 : vector<2x16xf32>
    %cst_12 = arith.constant dense<0xFF800000> : vector<2xf32>
    %27 = vector.multi_reduction <maximumf>, %26, %cst_12 [1] : vector<2x16xf32> to vector<2xf32>
    %28 = vector.shape_cast %27 : vector<2xf32> to vector<2x1xf32>
    %cst_13 = arith.constant dense<0x7F800000> : vector<1xf32>
    %29 = vector.multi_reduction <minimumf>, %28, %cst_13 [0] : vector<2x1xf32> to vector<1xf32>
    %30 = vector.shape_cast %29 : vector<1xf32> to vector<1x1xf32>
    %31 = vector.broadcast %30 : vector<1x1xf32> to vector<2x16xf32>
    %32 = arith.minimumf %26, %31 : vector<2x16xf32>
    %cst_14 = arith.constant dense<0.000000e+00> : vector<2xf32>
    %33 = vector.multi_reduction <add>, %32, %cst_14 [1] : vector<2x16xf32> to vector<2xf32>
    %34 = vector.shape_cast %33 : vector<2xf32> to vector<2x1xf32>
    %cst_15 = arith.constant 1.600000e+01 : f32
    %35 = vector.broadcast %cst_15 : f32 to vector<2x1xf32>
    %36 = arith.subf %35, %34 : vector<2x1xf32>
    %cst_16 = arith.constant 1.600000e+01 : f32
    %37 = vector.broadcast %cst_16 : f32 to vector<2x1xf32>
    %38 = arith.divf %36, %37 : vector<2x1xf32>
    %39 = vector.broadcast %38 : vector<2x1xf32> to vector<2x16xf32>
    %40 = arith.addf %32, %39 : vector<2x16xf32>
    %cst_17 = arith.constant dense<0xFF800000> : vector<2xf32>
    %41 = vector.multi_reduction <maximumf>, %40, %cst_17 [1] : vector<2x16xf32> to vector<2xf32>
    %42 = vector.shape_cast %41 : vector<2xf32> to vector<2x1xf32>
    %cst_18 = arith.constant dense<0x7F800000> : vector<1xf32>
    %43 = vector.multi_reduction <minimumf>, %42, %cst_18 [0] : vector<2x1xf32> to vector<1xf32>
    %44 = vector.shape_cast %43 : vector<1xf32> to vector<1x1xf32>
    %45 = vector.broadcast %44 : vector<1x1xf32> to vector<2x16xf32>
    %46 = arith.minimumf %40, %45 : vector<2x16xf32>
    %cst_19 = arith.constant dense<0.000000e+00> : vector<2xf32>
    %47 = vector.multi_reduction <add>, %46, %cst_19 [1] : vector<2x16xf32> to vector<2xf32>
    %48 = vector.shape_cast %47 : vector<2xf32> to vector<2x1xf32>
    %cst_20 = arith.constant 1.600000e+01 : f32
    %49 = vector.broadcast %cst_20 : f32 to vector<2x1xf32>
    %50 = arith.subf %49, %48 : vector<2x1xf32>
    %cst_21 = arith.constant 1.600000e+01 : f32
    %51 = vector.broadcast %cst_21 : f32 to vector<2x1xf32>
    %52 = arith.divf %50, %51 : vector<2x1xf32>
    %53 = vector.broadcast %52 : vector<2x1xf32> to vector<2x16xf32>
    %54 = arith.addf %46, %53 : vector<2x16xf32>
    %cst_22 = arith.constant dense<0xFF800000> : vector<2xf32>
    %55 = vector.multi_reduction <maximumf>, %54, %cst_22 [1] : vector<2x16xf32> to vector<2xf32>
    %56 = vector.shape_cast %55 : vector<2xf32> to vector<2x1xf32>
    %cst_23 = arith.constant dense<0x7F800000> : vector<1xf32>
    %57 = vector.multi_reduction <minimumf>, %56, %cst_23 [0] : vector<2x1xf32> to vector<1xf32>
    %58 = vector.shape_cast %57 : vector<1xf32> to vector<1x1xf32>
    %59 = vector.broadcast %58 : vector<1x1xf32> to vector<2x16xf32>
    %60 = arith.minimumf %54, %59 : vector<2x16xf32>
    %cst_24 = arith.constant dense<0.000000e+00> : vector<2xf32>
    %61 = vector.multi_reduction <add>, %60, %cst_24 [1] : vector<2x16xf32> to vector<2xf32>
    %62 = vector.shape_cast %61 : vector<2xf32> to vector<2x1xf32>
    %cst_25 = arith.constant 1.600000e+01 : f32
    %63 = vector.broadcast %cst_25 : f32 to vector<2x1xf32>
    %64 = arith.subf %63, %62 : vector<2x1xf32>
    %cst_26 = arith.constant 1.600000e+01 : f32
    %65 = vector.broadcast %cst_26 : f32 to vector<2x1xf32>
    %66 = arith.divf %64, %65 : vector<2x1xf32>
    %67 = vector.broadcast %66 : vector<2x1xf32> to vector<2x16xf32>
    %68 = arith.addf %60, %67 : vector<2x16xf32>
    %cst_27 = arith.constant dense<0xFF800000> : vector<2xf32>
    %69 = vector.multi_reduction <maximumf>, %68, %cst_27 [1] : vector<2x16xf32> to vector<2xf32>
    %70 = vector.shape_cast %69 : vector<2xf32> to vector<2x1xf32>
    %cst_28 = arith.constant dense<0x7F800000> : vector<1xf32>
    %71 = vector.multi_reduction <minimumf>, %70, %cst_28 [0] : vector<2x1xf32> to vector<1xf32>
    %72 = vector.shape_cast %71 : vector<1xf32> to vector<1x1xf32>
    %73 = vector.broadcast %72 : vector<1x1xf32> to vector<2x16xf32>
    %74 = arith.minimumf %68, %73 : vector<2x16xf32>
    %cst_29 = arith.constant dense<0.000000e+00> : vector<2xf32>
    %75 = vector.multi_reduction <add>, %74, %cst_29 [1] : vector<2x16xf32> to vector<2xf32>
    %76 = vector.shape_cast %75 : vector<2xf32> to vector<2x1xf32>
    %cst_30 = arith.constant 1.600000e+01 : f32
    %77 = vector.broadcast %cst_30 : f32 to vector<2x1xf32>
    %78 = arith.subf %77, %76 : vector<2x1xf32>
    %cst_31 = arith.constant 1.600000e+01 : f32
    %79 = vector.broadcast %cst_31 : f32 to vector<2x1xf32>
    %80 = arith.divf %78, %79 : vector<2x1xf32>
    %81 = vector.broadcast %80 : vector<2x1xf32> to vector<2x16xf32>
    %82 = arith.addf %74, %81 : vector<2x16xf32>
    %cst_32 = arith.constant 0.000000e+00 : f32
    %83 = vector.broadcast %cst_32 : f32 to vector<2x1xf32>
    %84 = vector.extract_strided_slice %82 {offsets = [0, 0], sizes = [2, 15], strides = [1, 1]} : vector<2x16xf32> to vector<2x15xf32>
    %85 = tpu.concatenate %83, %84 in 1 : vector<2x1xf32>, vector<2x15xf32> -> vector<2x16xf32>
    %86 = arith.addf %82, %85 : vector<2x16xf32>
    %cst_33 = arith.constant 0.000000e+00 : f32
    %87 = vector.broadcast %cst_33 : f32 to vector<2x2xf32>
    %88 = vector.extract_strided_slice %86 {offsets = [0, 0], sizes = [2, 14], strides = [1, 1]} : vector<2x16xf32> to vector<2x14xf32>
    %89 = tpu.concatenate %87, %88 in 1 : vector<2x2xf32>, vector<2x14xf32> -> vector<2x16xf32>
    %90 = arith.addf %86, %89 : vector<2x16xf32>
    %cst_34 = arith.constant 0.000000e+00 : f32
    %91 = vector.broadcast %cst_34 : f32 to vector<2x4xf32>
    %92 = vector.extract_strided_slice %90 {offsets = [0, 0], sizes = [2, 12], strides = [1, 1]} : vector<2x16xf32> to vector<2x12xf32>
    %93 = tpu.concatenate %91, %92 in 1 : vector<2x4xf32>, vector<2x12xf32> -> vector<2x16xf32>
    %94 = arith.addf %90, %93 : vector<2x16xf32>
    %cst_35 = arith.constant 0.000000e+00 : f32
    %95 = vector.broadcast %cst_35 : f32 to vector<2x8xf32>
    %96 = vector.extract_strided_slice %94 {offsets = [0, 0], sizes = [2, 8], strides = [1, 1]} : vector<2x16xf32> to vector<2x8xf32>
    %97 = tpu.concatenate %95, %96 in 1 : vector<2x8xf32>, vector<2x8xf32> -> vector<2x16xf32>
    %98 = arith.addf %94, %97 : vector<2x16xf32>
    %99 = arith.subf %98, %82 : vector<2x16xf32>
    %100 = tpu.iota {dimensions = array<i32: 1>} : vector<1x16xi32>
    %101 = arith.sitofp %100 : vector<1x16xi32> to vector<1x16xf32>
    %102 = tpu.iota {dimensions = array<i32: 0>} : vector<16x1xi32>
    %103 = arith.sitofp %102 : vector<16x1xi32> to vector<16x1xf32>
    %104 = vector.extract_strided_slice %82 {offsets = [0, 0], sizes = [1, 16], strides = [1, 1]} : vector<2x16xf32> to vector<1x16xf32>
    %105 = vector.extract_strided_slice %99 {offsets = [0, 0], sizes = [1, 16], strides = [1, 1]} : vector<2x16xf32> to vector<1x16xf32>
    %cst_36 = arith.constant 9.99999996E-13 : f32
    %106 = vector.broadcast %cst_36 : f32 to vector<1x16xf32>
    %107 = arith.maximumf %104, %106 : vector<1x16xf32>
    %108 = tpu.reciprocal %107 {approx = true} : vector<1x16xf32> -> vector<1x16xf32>
    %cst_37 = arith.constant dense<0.000000e+00> : vector<1xf32>
    %109 = vector.multi_reduction <add>, %104, %cst_37 [1] : vector<1x16xf32> to vector<1xf32>
    %110 = vector.shape_cast %109 : vector<1xf32> to vector<1x1xf32>
    %cst_38 = arith.constant 1.600000e+01 : f32
    %111 = vector.broadcast %cst_38 : f32 to vector<1x1xf32>
    %112 = arith.divf %110, %111 : vector<1x1xf32>
    %cst_39 = arith.constant 1.000000e+00 : f32
    %113 = vector.broadcast %cst_39 : f32 to vector<16x1xf32>
    %114 = arith.addf %103, %113 : vector<16x1xf32>
    %115 = vector.broadcast %112 : vector<1x1xf32> to vector<16x1xf32>
    %116 = arith.mulf %114, %115 : vector<16x1xf32>
    %117 = vector.broadcast %116 : vector<16x1xf32> to vector<16x16xf32>
    %118 = vector.broadcast %105 : vector<1x16xf32> to vector<16x16xf32>
    %119 = arith.subf %117, %118 : vector<16x16xf32>
    %120 = vector.broadcast %108 : vector<1x16xf32> to vector<16x16xf32>
    %121 = arith.mulf %119, %120 : vector<16x16xf32>
    %cst_40 = arith.constant 0.000000e+00 : f32
    %cst_41 = arith.constant 1.000000e+00 : f32
    %122 = vector.broadcast %cst_40 : f32 to vector<16x16xf32>
    %123 = arith.maximumf %122, %121 : vector<16x16xf32>
    %124 = vector.broadcast %cst_41 : f32 to vector<16x16xf32>
    %125 = arith.minimumf %124, %123 : vector<16x16xf32>
    %cst_42 = arith.constant dense<0.000000e+00> : vector<16xf32>
    %126 = vector.multi_reduction <add>, %125, %cst_42 [1] : vector<16x16xf32> to vector<16xf32>
    %127 = vector.shape_cast %126 : vector<16xf32> to vector<16x1xf32>
    %cst_43 = arith.constant 1.600000e+01 : f32
    %128 = vector.broadcast %cst_43 : f32 to vector<16x1xf32>
    %129 = arith.minimumf %127, %128 : vector<16x1xf32>
    %cst_44 = arith.constant 9.375000e-01 : f32
    %130 = vector.broadcast %cst_44 : f32 to vector<16x1xf32>
    %131 = arith.mulf %129, %130 : vector<16x1xf32>
    %132 = vector.broadcast %131 : vector<16x1xf32> to vector<16x16xf32>
    %133 = vector.broadcast %101 : vector<1x16xf32> to vector<16x16xf32>
    %134 = arith.subf %132, %133 : vector<16x16xf32>
    %135 = math.absf %134 : vector<16x16xf32>
    %cst_45 = arith.constant 1.000000e+00 : f32
    %136 = vector.broadcast %cst_45 : f32 to vector<16x16xf32>
    %137 = arith.subf %136, %135 : vector<16x16xf32>
    %cst_46 = arith.constant 0.000000e+00 : f32
    %138 = vector.broadcast %cst_46 : f32 to vector<16x16xf32>
    %139 = arith.maximumf %138, %137 : vector<16x16xf32>
    %140 = vector.extract_strided_slice %82 {offsets = [1, 0], sizes = [1, 16], strides = [1, 1]} : vector<2x16xf32> to vector<1x16xf32>
    %141 = vector.extract_strided_slice %99 {offsets = [1, 0], sizes = [1, 16], strides = [1, 1]} : vector<2x16xf32> to vector<1x16xf32>
    %cst_47 = arith.constant 9.99999996E-13 : f32
    %142 = vector.broadcast %cst_47 : f32 to vector<1x16xf32>
    %143 = arith.maximumf %140, %142 : vector<1x16xf32>
    %144 = tpu.reciprocal %143 {approx = true} : vector<1x16xf32> -> vector<1x16xf32>
    %cst_48 = arith.constant dense<0.000000e+00> : vector<1xf32>
    %145 = vector.multi_reduction <add>, %140, %cst_48 [1] : vector<1x16xf32> to vector<1xf32>
    %146 = vector.shape_cast %145 : vector<1xf32> to vector<1x1xf32>
    %cst_49 = arith.constant 1.600000e+01 : f32
    %147 = vector.broadcast %cst_49 : f32 to vector<1x1xf32>
    %148 = arith.divf %146, %147 : vector<1x1xf32>
    %cst_50 = arith.constant 1.000000e+00 : f32
    %149 = vector.broadcast %cst_50 : f32 to vector<16x1xf32>
    %150 = arith.addf %103, %149 : vector<16x1xf32>
    %151 = vector.broadcast %148 : vector<1x1xf32> to vector<16x1xf32>
    %152 = arith.mulf %150, %151 : vector<16x1xf32>
    %153 = vector.broadcast %152 : vector<16x1xf32> to vector<16x16xf32>
    %154 = vector.broadcast %141 : vector<1x16xf32> to vector<16x16xf32>
    %155 = arith.subf %153, %154 : vector<16x16xf32>
    %156 = vector.broadcast %144 : vector<1x16xf32> to vector<16x16xf32>
    %157 = arith.mulf %155, %156 : vector<16x16xf32>
    %cst_51 = arith.constant 0.000000e+00 : f32
    %cst_52 = arith.constant 1.000000e+00 : f32
    %158 = vector.broadcast %cst_51 : f32 to vector<16x16xf32>
    %159 = arith.maximumf %158, %157 : vector<16x16xf32>
    %160 = vector.broadcast %cst_52 : f32 to vector<16x16xf32>
    %161 = arith.minimumf %160, %159 : vector<16x16xf32>
    %cst_53 = arith.constant dense<0.000000e+00> : vector<16xf32>
    %162 = vector.multi_reduction <add>, %161, %cst_53 [1] : vector<16x16xf32> to vector<16xf32>
    %163 = vector.shape_cast %162 : vector<16xf32> to vector<16x1xf32>
    %cst_54 = arith.constant 1.600000e+01 : f32
    %164 = vector.broadcast %cst_54 : f32 to vector<16x1xf32>
    %165 = arith.minimumf %163, %164 : vector<16x1xf32>
    %cst_55 = arith.constant 9.375000e-01 : f32
    %166 = vector.broadcast %cst_55 : f32 to vector<16x1xf32>
    %167 = arith.mulf %165, %166 : vector<16x1xf32>
    %168 = vector.broadcast %167 : vector<16x1xf32> to vector<16x16xf32>
    %169 = vector.broadcast %101 : vector<1x16xf32> to vector<16x16xf32>
    %170 = arith.subf %168, %169 : vector<16x16xf32>
    %171 = math.absf %170 : vector<16x16xf32>
    %cst_56 = arith.constant 1.000000e+00 : f32
    %172 = vector.broadcast %cst_56 : f32 to vector<16x16xf32>
    %173 = arith.subf %172, %171 : vector<16x16xf32>
    %cst_57 = arith.constant 0.000000e+00 : f32
    %174 = vector.broadcast %cst_57 : f32 to vector<16x16xf32>
    %175 = arith.maximumf %174, %173 : vector<16x16xf32>
    %c0_58 = arith.constant 0 : index
    %c0_59 = arith.constant 0 : index
    %c0_60 = arith.constant 0 : index
    %c0_61 = arith.constant 0 : index
    %176 = vector.load %arg4[%c0_58, %c0_59, %c0_60, %c0_61] : memref<1x4x16x16xf32, #tpu.memory_space<vmem>>, vector<1x4x16x16xf32>
    %177 = vector.shape_cast %176 : vector<1x4x16x16xf32> to vector<4x16x16xf32>
    %178 = vector.shape_cast %177 : vector<4x16x16xf32> to vector<64x16xf32>
    %cst_62 = arith.constant dense<0.000000e+00> : vector<64x16xf32>
    %179 = tpu.matmul %178, %139, %cst_62 {dimension_numbers = #tpu.dot_dimension_numbers<[1], [1], [0], [0], [0, 0, 1, 0], [], []>} : vector<64x16xf32>, vector<16x16xf32>, vector<64x16xf32> -> vector<64x16xf32>
    %180 = vector.shape_cast %179 : vector<64x16xf32> to vector<4x16x16xf32>
    %181 = vector.extract_strided_slice %180 {offsets = [0, 0, 0], sizes = [1, 16, 16], strides = [1, 1, 1]} : vector<4x16x16xf32> to vector<1x16x16xf32>
    %182 = vector.shape_cast %181 : vector<1x16x16xf32> to vector<16x16xf32>
    %cst_63 = arith.constant dense<0.000000e+00> : vector<16x16xf32>
    %183 = tpu.matmul %175, %182, %cst_63 {dimension_numbers = #tpu.dot_dimension_numbers<[1], [0], [0], [1], [0, 0, 1, 1], [], []>} : vector<16x16xf32>, vector<16x16xf32>, vector<16x16xf32> -> vector<16x16xf32>
    %c0_64 = arith.constant 0 : index
    %c0_65 = arith.constant 0 : index
    %c0_66 = arith.constant 0 : index
    %c0_67 = arith.constant 0 : index
    %184 = vector.load %arg5[%c0_64, %c0_65, %c0_66, %c0_67] : memref<1x4x16x16xf32, #tpu.memory_space<vmem>>, vector<1x1x16x16xf32>
    %185 = vector.shape_cast %184 : vector<1x1x16x16xf32> to vector<16x16xf32>
    %186 = vector.shape_cast %183 : vector<16x16xf32> to vector<1x1x16x16xf32>
    tpu.vector_store %arg5[%c0_64, %c0_65, %c0_66, %c0_67], %186 {strides = array<i32>} : memref<1x4x16x16xf32, #tpu.memory_space<vmem>>, vector<1x1x16x16xf32>,
    %187 = vector.extract_strided_slice %180 {offsets = [1, 0, 0], sizes = [1, 16, 16], strides = [1, 1, 1]} : vector<4x16x16xf32> to vector<1x16x16xf32>
    %188 = vector.shape_cast %187 : vector<1x16x16xf32> to vector<16x16xf32>
    %cst_68 = arith.constant dense<0.000000e+00> : vector<16x16xf32>
    %189 = tpu.matmul %175, %188, %cst_68 {dimension_numbers = #tpu.dot_dimension_numbers<[1], [0], [0], [1], [0, 0, 1, 1], [], []>} : vector<16x16xf32>, vector<16x16xf32>, vector<16x16xf32> -> vector<16x16xf32>
    %c0_69 = arith.constant 0 : index
    %c1 = arith.constant 1 : index
    %c0_70 = arith.constant 0 : index
    %c0_71 = arith.constant 0 : index
    %190 = vector.load %arg5[%c0_69, %c1, %c0_70, %c0_71] : memref<1x4x16x16xf32, #tpu.memory_space<vmem>>, vector<1x1x16x16xf32>
    %191 = vector.shape_cast %190 : vector<1x1x16x16xf32> to vector<16x16xf32>
    %192 = vector.shape_cast %189 : vector<16x16xf32> to vector<1x1x16x16xf32>
    tpu.vector_store %arg5[%c0_69, %c1, %c0_70, %c0_71], %192 {strides = array<i32>} : memref<1x4x16x16xf32, #tpu.memory_space<vmem>>, vector<1x1x16x16xf32>,
    %193 = vector.extract_strided_slice %180 {offsets = [2, 0, 0], sizes = [1, 16, 16], strides = [1, 1, 1]} : vector<4x16x16xf32> to vector<1x16x16xf32>
    %194 = vector.shape_cast %193 : vector<1x16x16xf32> to vector<16x16xf32>
    %cst_72 = arith.constant dense<0.000000e+00> : vector<16x16xf32>
    %195 = tpu.matmul %175, %194, %cst_72 {dimension_numbers = #tpu.dot_dimension_numbers<[1], [0], [0], [1], [0, 0, 1, 1], [], []>} : vector<16x16xf32>, vector<16x16xf32>, vector<16x16xf32> -> vector<16x16xf32>
    %c0_73 = arith.constant 0 : index
    %c2 = arith.constant 2 : index
    %c0_74 = arith.constant 0 : index
    %c0_75 = arith.constant 0 : index
    %196 = vector.load %arg5[%c0_73, %c2, %c0_74, %c0_75] : memref<1x4x16x16xf32, #tpu.memory_space<vmem>>, vector<1x1x16x16xf32>
    %197 = vector.shape_cast %196 : vector<1x1x16x16xf32> to vector<16x16xf32>
    %198 = vector.shape_cast %195 : vector<16x16xf32> to vector<1x1x16x16xf32>
    tpu.vector_store %arg5[%c0_73, %c2, %c0_74, %c0_75], %198 {strides = array<i32>} : memref<1x4x16x16xf32, #tpu.memory_space<vmem>>, vector<1x1x16x16xf32>,
    %199 = vector.extract_strided_slice %180 {offsets = [3, 0, 0], sizes = [1, 16, 16], strides = [1, 1, 1]} : vector<4x16x16xf32> to vector<1x16x16xf32>
    %200 = vector.shape_cast %199 : vector<1x16x16xf32> to vector<16x16xf32>
    %cst_76 = arith.constant dense<0.000000e+00> : vector<16x16xf32>
    %201 = tpu.matmul %175, %200, %cst_76 {dimension_numbers = #tpu.dot_dimension_numbers<[1], [0], [0], [1], [0, 0, 1, 1], [], []>} : vector<16x16xf32>, vector<16x16xf32>, vector<16x16xf32> -> vector<16x16xf32>
    %c0_77 = arith.constant 0 : index
    %c3 = arith.constant 3 : index
    %c0_78 = arith.constant 0 : index
    %c0_79 = arith.constant 0 : index
    %202 = vector.load %arg5[%c0_77, %c3, %c0_78, %c0_79] : memref<1x4x16x16xf32, #tpu.memory_space<vmem>>, vector<1x1x16x16xf32>
    %203 = vector.shape_cast %202 : vector<1x1x16x16xf32> to vector<16x16xf32>
    %204 = vector.shape_cast %201 : vector<16x16xf32> to vector<1x1x16x16xf32>
    tpu.vector_store %arg5[%c0_77, %c3, %c0_78, %c0_79], %204 {strides = array<i32>} : memref<1x4x16x16xf32, #tpu.memory_space<vmem>>, vector<1x1x16x16xf32>,
    return
  }
  func.func @transform_0(%arg0: i32, %arg1: i32) -> (i32, i32, i32) {
    %c0_i32 = arith.constant 0 : i32
    %c0_i32_0 = arith.constant 0 : i32
    %c0_i32_1 = arith.constant 0 : i32
    return %arg0, %c0_i32, %c0_i32_0 : i32, i32, i32
  }
  func.func @transform_1(%arg0: i32, %arg1: i32) -> (i32, i32, i32) {
    %c0_i32 = arith.constant 0 : i32
    %c0_i32_0 = arith.constant 0 : i32
    %c0_i32_1 = arith.constant 0 : i32
    return %arg0, %c0_i32, %c0_i32_0 : i32, i32, i32
  }
  func.func @transform_2(%arg0: i32, %arg1: i32) -> (i32, i32, i32, i32) {
    %c0_i32 = arith.constant 0 : i32
    %c0_i32_0 = arith.constant 0 : i32
    %c0_i32_1 = arith.constant 0 : i32
    return %arg0, %arg1, %c0_i32, %c0_i32_0 : i32, i32, i32, i32
  }
  func.func @transform_3(%arg0: i32, %arg1: i32) -> (i32, i32, i32, i32) {
    %c0_i32 = arith.constant 0 : i32
    %c0_i32_0 = arith.constant 0 : i32
    %c0_i32_1 = arith.constant 0 : i32
    return %arg0, %arg1, %c0_i32, %c0_i32_0 : i32, i32, i32, i32
  }
}

</mosaic_0001>

<bundles_post_ra>
// kernel: tpu_custom_call.1
= control target key start
LH: loop header
LB: loop body
LE: loop exit
PB: predicated region body
PF: predicated region fallthrough
CT: control target
= control target key end

     0   :  { %s1769_s0 = inlined_call_operand.hbm [shape: f32[2,1,16], index: 0, kind: input, shape index: {}]   ;;  %s1770_s1 = inlined_call_operand.hbm [shape: f32[2,1,16], index: 1, kind: input, shape index: {}]   ;;  %s1771_s2 = inlined_call_operand.hbm [shape: f32[2,4,16,16], index: 2, kind: input, shape index: {}]   ;;  %s1772_s3 = inlined_call_operand.hbm [shape: f32[2,4,16,16], index: 3, kind: output, shape index: {}]  }
   0x1   :  { %1774 = sst [smem:[#allocation13_spill]] %s1769_s0 }
   0x2   :  { %1775 = sst [smem:[#allocation14_spill]] %s1770_s1 }
   0x3   :  { %8 = vsyncpa [#allocation3], 0 }
   0x4   :  { %10 = vsyncpa [#allocation3 + $0x1], 0 }
   0x5   :  { %11 = vsyncpa [#allocation6], 0 }
   0x6   :  { %13 = vsyncpa [#allocation6 + $0x1], 0 }
   0x7   :  { %14 = vsyncpa [#allocation4], 0 }
   0x8   :  { %16 = vsyncpa [#allocation4 + $0x1], 0  ;;  %s1511_s12 = smov 0   ;;  %s1513_s13 = smov 0  }
   0x9   :  { %s1515_s14 = smov 0   ;;  %s1517_s15 = smov 0  }
   0xa   :  { %s1519_s16 = smov 0   ;;  %s1521_s17 = smov 0  }
   0xb LB: > { %s1542_s18 = sadd.s32 4294967295, %s1478_s17   ;;  %s1114_s19 = sadd.s32 4294967294, %s1478_s17   ;;  %s1478_s17 = sphi %s1521_s17, %s22_s17   ;;  %s1474_s16 = sphi %s1519_s16, %s1791_s16   ;;  %s1470_s15 = sphi %s1517_s15, %s1790_s15   ;;  %s1466_s14 = sphi %s1515_s14, %s1789_s14   ;;  %s1462_s13 = sphi %s1513_s13, %s1788_s13   ;;  %s1458_s12 = sphi %s1511_s12, %s1787_s12  }
   0xc   : > { %s34_s20 = sadd.s32 1, %s1474_s16  ;;  %s41_s21 = sadd.s32 1, %s1466_s14 }
   0xd   : > { %p36_p0 = scmp.ge.s32.totalorder %s34_s20, 2  ;;  %p48_p1 = scmp.ne.s32.totalorder %s1466_s14, %s1462_s13 }
   0xe   : > { %p49_p2 = scmp.eq.s32.totalorder %s1478_s17, 0  ;;  %p54_p3 = scmp.ne.s32.totalorder %s1462_s13, %s1458_s12 }
   0xf   : > { %s1793_s20 = smov (%p36_p0, %s34_s20), 0  ;;  %p55_p5 = scmp.eq.s32.totalorder %s1542_s18, 0 }
  0x10   : > { %1776 = sst [smem:[#allocation12_spill]] %s1793_s20  ;;  %p1554_p4 = por %p49_p2, %p48_p1 }
  0x11   : > { %s38_s23 = ssub.s32 %s1474_s16, %s1793_s20  ;;  %p134_p6 = scmp.eq.s32.totalorder %s1542_s18, 1 }
  0x12   : > { %p39_p7 = scmp.eq.s32.totalorder %s38_s23, 0  ;;  %p1562_p8 = por %p55_p5, %p54_p3 }
  0x13   : > { %p1566_p9 = por %p134_p6, %p48_p1  ;;  %p140_p10 = scmp.eq.s32.totalorder %s1114_s19, 1 }
  0x14   : > { %s1571_s26 = scalar_select %p39_p7, %s1466_s14, %s41_s21  }
  0x15   : > { %p1573_p11 = por %p140_p10, %p54_p3  ;;  %p1116_p12 = scmp.ge.s32.totalorder %s1478_s17, 2 }
  0x16   : > { %p1249_p13 = scmp.lt.s32.totalorder %s1478_s17, 2  ;;  %s1580_s28 = sand.u32 1, %s1466_s14  }
  0x17   : > { %s1117_s29 = sshll.u32 %s1474_s16, 4  ;;  %s177_s30 = sand.u32 1, %s1478_s17  }
  0x18   : > { %p1586_p0 = pnand %p1249_p13, %p1554_p4  ;;  %s1782_s1 = sld [smem:[#allocation14_spill]] }
  0x19   : > { %s180_s8 = scalar_lea.vmem [#allocation5], %s1580_s28  ;;  %s1595_s11 = scalar_lea.sflag [#allocation6], %s177_s30 }
  0x1a   : > { %s187_s9 = sshll.u32 %s180_s8, 4  ;;  %p1312_p1 = pneg %p1586_p0  ;;  %s188_s9 = int_to_ptr.vmem [resolvable:$true] %s187_s9 }
  0x1b   : > { %s1323_s19 = scalar_lea.vmem %s188_s9, 16  ;;  %s1480_s21 = smov [#allocation5]  }
  0x1c   : > { %p1324_p2 = scmp.ne.s32.totalorder %s188_s9, %s1323_s19  ;;  %s1328_s22 = sshll.u32 %s1480_s21, 4  ;;  %s1329_s22 = int_to_ptr.vmem [resolvable:$false] %s1328_s22 }
  0x1d   : > { %s1330_s23 = scalar_lea.vmem %s1329_s22, 32  ;;  %p1331_p5 = scmp.lt.s32.totalorder %s188_s9, %s1329_s22 }
  0x1e   : > { %s185_s7 = scalar_lea.hbm %s1782_s1, %s1117_s29  ;;  %p1326_p3 = pnand %p1324_p2, %p1312_p1 }
  0x1f   : > { %p1332_p6 = scmp.lt.s32.totalorder %s1330_s23, %s1323_s19 }
  0x20   : > { %p1327_p4 = pneg %p1326_p3 }
  0x21   : > { %p1333_p7 = por %p1332_p6, %p1331_p5 }
  0x23   : > { %p1334_p10 = pnand %p1333_p7, %p1327_p4 }
  0x25   : > { %1337 = shalt.err (!%p1334_p10)
}
  0x26   : > { %1241 = dma.hbm_to_vmem [thread:$0]  (!%p1586_p0), %s185_s7, 16, %s188_s9, %s1595_s11  }
  0x27   : > { %p1122_p13 = scmp.ge.s32.totalorder %s1478_s17, 1  ;;  %p216_p2 = scmp.lt.s32.totalorder %s1478_s17, 3 }
  0x28   : > { %s1784_s0 = sld [smem:[#allocation13_spill]]  ;;  %s163_s19 = scalar_lea.vmem [#allocation2], %s1580_s28 }
  0x29   : > { %p1607_p3 = pnand %p1122_p13, %p216_p2  ;;  %s170_s21 = sshll.u32 %s163_s19, 4  ;;  %s171_s21 = int_to_ptr.vmem [resolvable:$true] %s170_s21 }
  0x2a   : > { %s1155_s22 = sshll.u32 %s1474_s16, 10  ;;  %s161_s23 = scalar_lea.sflag [#allocation3], %s1580_s28 }
  0x2b   : > { %s1351_s10 = scalar_lea.vmem %s171_s21, 16  ;;  %s1481_s7 = smov [#allocation2]  }
  0x2c   : > { %p1352_p4 = scmp.ne.s32.totalorder %s171_s21, %s1351_s10  ;;  %s1356_s9 = sshll.u32 %s1481_s7, 4  ;;  %s1357_s9 = int_to_ptr.vmem [resolvable:$false] %s1356_s9 }
  0x2d   : > { %s1358_s1 = scalar_lea.vmem %s1357_s9, 32  ;;  %p1359_p7 = scmp.lt.s32.totalorder %s171_s21, %s1357_s9 }
  0x2e   : > { %s168_s8 = scalar_lea.hbm %s1784_s0, %s1117_s29  ;;  %p1354_p5 = pnand %p1352_p4, %p1312_p1 }
  0x2f   : > { %p1360_p10 = scmp.lt.s32.totalorder %s1358_s1, %s1351_s10 }
  0x30   : > { %p1355_p6 = pneg %p1354_p5 }
  0x31   : > { %p1361_p13 = por %p1360_p10, %p1359_p7 }
  0x33   : > { %p1362_p2 = pnand %p1361_p13, %p1355_p6 }
  0x35   : > { %1365 = shalt.err (!%p1362_p2)
}
  0x36   : > { %1238 = dma.hbm_to_vmem [thread:$0]  (!%p1586_p0), %s168_s8, 16, %s171_s21, %s161_s23  }
  0x37   : > { %s207_s6 = scalar_lea.hbm %s1771_s2, %s1155_s22  ;;  %s1785_s19 = sshll.u32 %s1580_s28, 6 }
  0x38   : > { %s198_s0 = scalar_lea.vmem [#allocation7], %s1785_s19  ;;  %s1482_s1 = smov [#allocation7]  }
  0x39   : > { %s208_s20 = sshll.u32 %s198_s0, 4  ;;  %s1384_s10 = sshll.u32 %s1482_s1, 4  ;;  %s209_s20 = int_to_ptr.vmem [resolvable:$true] %s208_s20  ;;  %s1385_s10 = int_to_ptr.vmem [resolvable:$false] %s1384_s10 }
  0x3a   : > { %s1379_s7 = scalar_lea.vmem %s209_s20, 1024  ;;  %s1386_s9 = scalar_lea.vmem %s1385_s10, 2048 }
  0x3b   : > { %p1380_p4 = scmp.ne.s32.totalorder %s209_s20, %s1379_s7  ;;  %p1387_p7 = scmp.lt.s32.totalorder %s209_s20, %s1385_s10 }
  0x3c   : > { %p1388_p10 = scmp.lt.s32.totalorder %s1386_s9, %s1379_s7 }
  0x3d   : > { %p1382_p5 = pnand %p1380_p4, %p1312_p1 }
  0x3e   : > { %p1389_p13 = por %p1388_p10, %p1387_p7 }
  0x3f   : > { %p1383_p6 = pneg %p1382_p5 }
  0x41   : > { %p1390_p2 = pnand %p1389_p13, %p1383_p6 }
  0x43   : > { %1393 = shalt.err (!%p1390_p2)
}
  0x44   : > { %s1483_s8 = smov 128   ;;  %s1484_s0 = smov 8  }
  0x45   : > { %1244 = dma.hbm_to_vmem [thread:$0]  (!%p1586_p0), %s207_s6, 1024, %s209_s20, %s1595_s11, %s1483_s8, %s1483_s8, %s1484_s0  }
  0x46   : > { %220 = sbr.rel (%p1607_p3) target bundleno = 2797 (0xaed), region = 32  ;;  %s1636_s28 = sand.u32 (!%p1607_p3), 1, %s1462_s13  }
  0x47   : > { %s223_s21 = scalar_lea.sflag (!%p1607_p3), [#allocation3], %s1636_s28  ;;  %s225_s22 = scalar_lea.vmem (!%p1607_p3), [#allocation2], %s1636_s28 }
  0x4b   : > { %1445 = dma.done.wait (%p1562_p8), %s223_s21, 16  }
  0x4c   : > { %1447 = vsyncadd (%p1562_p8), %s223_s21, 4294967280  ;;  %s230_s20 = sand.u32 1, %s1542_s18   ;;  %s233_s11 = scalar_lea.vmem [#allocation5], %s1636_s28 }
  0x4d   : > { %s231_s4 = scalar_lea.sflag [#allocation6], %s230_s20 }
  0x4e   : > { %1449 = dma.done.wait (%p1562_p8), %s231_s4, 1040  }
  0x4f   : > { %1451 = vsyncadd (%p1562_p8), %s231_s4, 4294966256  ;;  %vm283_vm0 = vcmask 1040384   ;;  %vm285_vm1 = vcmask 123904   ;;  %v275_v0 = vld [vmem:[%s225_s22] sm:$0x1]  ;;  %vm295_vm2 = vcmask 1041408  }
  0x50   : > { %v1125_v1 = vld [vmem:[%s233_s11] ss:$0 sm:$0xff]  ;;  %s1485_s18 = smov 1   ;;  %vm384_vm3 = vcmask 7168   ;;  %s1486_s24 = smov 2   ;;  %vm391_vm4 = vcmask 15360  }
  0x51   : > { %v284_v2 = vsel %vm283_vm0, %v275_v0, %v1125_v1  ;;  %s1487_s30 = smov 4   ;;  %vm419_vm5 = vcmask 122880   ;;  %vm398_vm6 = vcmask 31744   ;;  %s1488_s23 = smov 8   ;;  %vm405_vm7 = vcmask 64512  }
  0x52   : > { %v286_v3 = vsel %vm285_vm1, %v284_v2, 0.0  ;;  %vm448_vm8 = vcmask 130048   ;;  %vm467_vm9 = vcmask 123905   ;;  %s1123_s29 = sshll.u32 %s1636_s28, 6  ;;  %s1156_s7 = sshll.u32 %s1470_s15, 10 }
  0x53   : > { %287 = vadd.xlane.f32.xlu0 %v286_v3  ;;  %s1672_s5 = scalar_lea.vmem [#allocation7], %s1123_s29  ;;  %s272_s6 = scalar_lea.vmem [#allocation8], %s1123_s29 }
  0x54   : > { %s989_s19 = sshll.u32 %s272_s6, 4  ;;  %s1719_s9 = scalar_lea.hbm %s1772_s3, %s1156_s7  ;;  %s1713_s19 = int_to_ptr.vmem [resolvable:$true] %s989_s19 }
  0x55   : > { %s973_s8 = scalar_lea.sflag [#allocation4], %s1636_s28  ;;  %s1394_s15 = scalar_lea.vmem %s1713_s19, 1024 }
  0x56   : > { %p1395_p8 = scmp.ne.s32.totalorder %s1713_s19, %s1394_s15  ;;  %s1489_s0 = smov [#allocation8]  }
  0x57   : > { %s1398_s21 = sshll.u32 %s1489_s0, 4  ;;  %s1399_s21 = int_to_ptr.vmem [resolvable:$false] %s1398_s21 }
  0x58   : > { %p1396_p0 = pnand %p1395_p8, %p1566_p9  ;;  %s1400_s22 = scalar_lea.vmem %s1399_s21, 2048 }
  0x59   : > { %p1401_p3 = scmp.lt.s32.totalorder %s1713_s19, %s1399_s21  ;;  %p1402_p4 = scmp.lt.s32.totalorder %s1400_s22, %s1394_s15 }
  0x5a   : > { %p1397_p1 = pneg %p1396_p0 }
  0x5b   : > { %p1403_p5 = por %p1402_p4, %p1401_p3 }
  0x5d   : > { %p1404_p6 = pnand %p1403_p5, %p1397_p1 }
  0xdc   : > { %v288_v4 = vpop.xlane.xlu0 %287 }
  0xdd   : > { %1306 = vrcp.f32 %v288_v4 }
  0xea   : > { %v1307_v5 = vpop.eup %1306 }
  0xeb   : > { %v290_v6 = vmul.f32 16.0, %v1307_v5 }
  0xed   : > { %v291_v7 = vmul.f32 %v290_v6, %v284_v2 }
  0xef   : > { %v292_v8 = vsel %vm285_vm1, %v291_v7, -inf }
  0xf0   : > { %293 = vmax.xlane.f32.xlu0 %v292_v8 }
 0x179   : > { %v294_v9 = vpop.xlane.xlu0 %293 }
 0x17a   : > { %v296_v10 = vsel %vm295_vm2, %v294_v9, inf }
 0x17b   : > { %v297_v11 = vrot.slane %v296_v10, 4 }
 0x17d   : > { %v298_v12 = vmin.f32 %v296_v10, %v297_v11 }
 0x17f   : > { %v299_v13 = vrot.slane %v298_v12, 2 }
 0x181   : > { %v300_v14 = vmin.f32 %v298_v12, %v299_v13 }
 0x183   : > { %v301_v15 = vrot.slane %v300_v14, 1 }
 0x185   : > { %v302_v16 = vmin.f32 %v300_v14, %v301_v15 }
 0x187   : > { %v303_v17 = vmin.f32 %v302_v16, 4.0 }
 0x189   : > { %v304_v18 = vmin.f32 %v291_v7, %v303_v17 }
 0x18b   : > { %v305_v19 = vsel %vm285_vm1, %v304_v18, 0.0 }
 0x18c   : > { %306 = vadd.xlane.f32.xlu1 %v305_v19 }
 0x215   : > { %v307_v20 = vpop.xlane.xlu1 %306 }
 0x216   : > { %v308_v21 = vsub.f32 16.0, %v307_v20 }
 0x218   : > { %v310_v22 = vmul.f32 0.0625, %v308_v21 }
 0x21a   : > { %v311_v23 = vadd.f32 %v310_v22, %v304_v18 }
 0x21c   : > { %v312_v24 = vsel %vm285_vm1, %v311_v23, -inf }
 0x21d   : > { %313 = vmax.xlane.f32.xlu1 %v312_v24 }
 0x2a6   : > { %v314_v25 = vpop.xlane.xlu1 %313 }
 0x2a7   : > { %v315_v26 = vsel %vm295_vm2, %v314_v25, inf }
 0x2a8   : > { %v316_v27 = vrot.slane %v315_v26, 4 }
 0x2aa   : > { %v317_v28 = vmin.f32 %v315_v26, %v316_v27 }
 0x2ac   : > { %v318_v29 = vrot.slane %v317_v28, 2 }
 0x2ae   : > { %v319_v30 = vmin.f32 %v317_v28, %v318_v29 }
 0x2b0   : > { %v320_v31 = vrot.slane %v319_v30, 1 }
 0x2b2   : > { %v321_v32 = vmin.f32 %v319_v30, %v320_v31  ;;  %v409_v30 = vlaneseq }
 0x2b4   : > { %v322_v33 = vmin.f32 %v311_v23, %v321_v32  ;;  %v413_v32 = vshrl.u32 %v409_v30, 7 }
 0x2b6   : > { %v323_v34 = vsel %vm285_vm1, %v322_v33, 0.0 }
 0x2b7   : > { %324 = vadd.xlane.f32.xlu0 %v323_v34 }
 0x340   : > { %v325_v35 = vpop.xlane.xlu0 %324 }
 0x341   : > { %v326_v36 = vsub.f32 16.0, %v325_v35  ;;  %v415_v35 = vcvt.s32.f32 %v413_v32 }
 0x343   : > { %v327_v37 = vmul.f32 0.0625, %v326_v36 }
 0x345   : > { %v328_v38 = vadd.f32 %v327_v37, %v322_v33  ;;  %v414_v33 = vadd.s32 8, %v413_v32 }
 0x347   : > { %v329_v39 = vsel %vm285_vm1, %v328_v38, -inf  ;;  %v416_v36 = vcvt.s32.f32 %v414_v33 }
 0x348   : > { %330 = vmax.xlane.f32.xlu1 %v329_v39 }
 0x3d1   : > { %v331_v40 = vpop.xlane.xlu1 %330 }
 0x3d2   : > { %v332_v41 = vsel %vm295_vm2, %v331_v40, inf }
 0x3d3   : > { %v333_v42 = vrot.slane %v332_v41, 4 }
 0x3d5   : > { %v334_v43 = vmin.f32 %v332_v41, %v333_v42  ;;  %v424_v41 = vadd.f32 1.0, %v415_v35  ;;  %v425_v42 = vadd.f32 1.0, %v416_v36  ;;  %v515_v35 = vld [vmem:[%s1672_s5 + $0x18] sm:$0xff]  ;;  %v516_v36 = vld [vmem:[%s1672_s5 + $0x20] sm:$0xff] }
 0x3d7   : > { %v335_v44 = vrot.slane %v334_v43, 2 }
 0x3d9   : > { %v336_v45 = vmin.f32 %v334_v43, %v335_v44 }
 0x3db   : > { %v337_v46 = vrot.slane %v336_v45, 1 }
 0x3dd   : > { %v338_v47 = vmin.f32 %v336_v45, %v337_v46 }
 0x3df   : > { %v339_v48 = vmin.f32 %v328_v38, %v338_v47  ;;  %v428_v38 = vsub.s32 0, %v413_v32 }
 0x3e1   : > { %v340_v49 = vsel %vm285_vm1, %v339_v48, 0.0 }
 0x3e2   : > { %341 = vadd.xlane.f32.xlu0 %v340_v49 }
 0x46b   : > { %v342_v50 = vpop.xlane.xlu0 %341 }
 0x46c   : > { %v343_v51 = vsub.f32 16.0, %v342_v50 }
 0x46e   : > { %v344_v52 = vmul.f32 0.0625, %v343_v51 }
 0x470   : > { %v345_v53 = vadd.f32 %v344_v52, %v339_v48 }
 0x472   : > { %v346_v54 = vsel %vm285_vm1, %v345_v53, -inf }
 0x473   : > { %347 = vmax.xlane.f32.xlu1 %v346_v54 }
 0x4fc   : > { %v348_v55 = vpop.xlane.xlu1 %347 }
 0x4fd   : > { %v349_v56 = vsel %vm295_vm2, %v348_v55, inf }
 0x4fe   : > { %v350_v57 = vrot.slane %v349_v56, 4 }
 0x500   : > { %v351_v58 = vmin.f32 %v349_v56, %v350_v57 }
 0x502   : > { %v352_v59 = vrot.slane %v351_v58, 2 }
 0x504   : > { %v353_v60 = vmin.f32 %v351_v58, %v352_v59 }
 0x506   : > { %v354_v61 = vrot.slane %v353_v60, 1 }
 0x508   : > { %v355_v62 = vmin.f32 %v353_v60, %v354_v61 }
 0x50a   : > { %v356_v63 = vmin.f32 %v345_v53, %v355_v62  ;;  %v512_v62 = vld [vmem:[%s1672_s5] sm:$0xff] }
 0x50b   : > { %1187 = vmatprep.mubr.msk.f32.mxu0 %vm448_vm8, %v512_v62 }
 0x50c   : > { %v357_v0 = vsel %vm285_vm1, %v356_v63, 0.0 }
 0x50d   : > { %358 = vadd.xlane.f32.xlu0 %v357_v0 }
 0x596   : > { %v359_v1 = vpop.xlane.xlu0 %358 }
 0x597   : > { %v360_v2 = vsub.f32 16.0, %v359_v1 }
 0x599   : > { %v361_v3 = vmul.f32 0.0625, %v360_v2 }
 0x59b   : > { %v362_v4 = vadd.f32 %v361_v3, %v356_v63  ;;  %v410_v63 = vand.u32 127, %v409_v30 }
 0x59d   : > { %v363_v5 = vsel %vm285_vm1, %v362_v4, -inf  ;;  %v411_v3 = vcvt.s32.f32 %v410_v63 }
 0x59e   : > { %364 = vmax.xlane.f32.xlu1 %v363_v5 }
 0x627   : > { %v365_v6 = vpop.xlane.xlu1 %364 }
 0x628   : > { %v366_v7 = vsel %vm295_vm2, %v365_v6, inf }
 0x629   : > { %v367_v8 = vrot.slane %v366_v7, 4 }
 0x62b   : > { %v368_v9 = vmin.f32 %v366_v7, %v367_v8  ;;  %v474_v8 = vsub.s32 1, %v413_v32 }
 0x62d   : > { %v369_v10 = vrot.slane %v368_v9, 2 }
 0x62f   : > { %v370_v11 = vmin.f32 %v368_v9, %v369_v10 }
 0x631   : > { %v371_v12 = vrot.slane %v370_v11, 1 }
 0x633   : > { %v372_v13 = vmin.f32 %v370_v11, %v371_v12 }
 0x635   : > { %v373_v14 = vmin.f32 %v362_v4, %v372_v13 }
 0x637   : > { %v374_v15 = vsel %vm285_vm1, %v373_v14, 0.0 }
 0x638   : > { %375 = vadd.xlane.f32.xlu0 %v374_v15 }
 0x6c1   : > { %v376_v16 = vpop.xlane.xlu0 %375 }
 0x6c2   : > { %v377_v17 = vsub.f32 16.0, %v376_v16 }
 0x6c4   : > { %v378_v18 = vmul.f32 0.0625, %v377_v17 }
 0x6c6   : > { %v379_v19 = vadd.f32 %v378_v18, %v373_v14 }
 0x6c8   : > { %381 = vrot.lane.b32.xlu1 %v379_v19, %s1485_s18  ;;  %v420_v26 = vsel %vm419_vm5, %v379_v19, 0.0  ;;  %v417_v31 = vmax.f32 %v379_v19, 1e-12  ;;  %v468_v61 = vsel %vm467_vm9, %v379_v19, 0.0 }
 0x6ca   : > { %1308 = vrcp.f32 %v417_v31  ;;  %v513_v31 = vld [vmem:[%s1672_s5 + $0x8] sm:$0xff] }
 0x6d7   : > { %v1309_v46 = vpop.eup %1308 }
 0x6d8   : > { %v441_v51 = vrot.slane %v1309_v46, %v428_v38 }
 0x73a   : > { %v382_v20 = vpop.permute.xlu1 %381 }
 0x73b   : > { %v385_v21 = vsel %vm384_vm3, 0.0, %v382_v20 }
 0x73c   : > { %v386_v22 = vadd.f32 %v385_v21, %v379_v19 }
 0x73e   : > { %388 = vrot.lane.b32.xlu0 %v386_v22, %s1486_s24 }
 0x7b0   : > { %v389_v23 = vpop.permute.xlu0 %388 }
 0x7b1   : > { %v392_v24 = vsel %vm391_vm4, 0.0, %v389_v23 }
 0x7b2   : > { %v393_v25 = vadd.f32 %v392_v24, %v386_v22  ;;  %v487_v22 = vrot.slane %v1309_v46, %v474_v8 }
 0x7b4   : > { %395 = vrot.lane.b32.xlu1 %v393_v25, %s1487_s30 }
 0x7d8   : > { %421 = vadd.xlane.f32.xlu1 %v420_v26 }
 0x826   : > { %v396_v27 = vpop.permute.xlu1 %395 }
 0x827   : > { %v399_v28 = vsel %vm398_vm6, 0.0, %v396_v27 }
 0x828   : > { %v400_v29 = vadd.f32 %v399_v28, %v393_v25 }
 0x82a   : > { %402 = vrot.lane.b32.xlu0 %v400_v29, %s1488_s23 }
 0x861   : > { %v422_v34 = vpop.xlane.xlu1 %421 }
 0x862   : > { %v423_v37 = vmul.f32 0.0625, %v422_v34  ;;  %v514_v34 = vld [vmem:[%s1672_s5 + $0x10] sm:$0xff] }
 0x864   : > { %v429_v43 = vrot.slane %v423_v37, %v428_v38  ;;  %v517_v37 = vld [vmem:[%s1672_s5 + $0x28] sm:$0xff] }
 0x866   : > { %v430_v47 = vmul.f32 %v429_v43, %v424_v41  ;;  %v431_v48 = vmul.f32 %v429_v43, %v425_v42 }
 0x89c   : > { %v403_v39 = vpop.permute.xlu0 %402 }
 0x89d   : > { %v406_v40 = vsel %vm405_vm7, 0.0, %v403_v39  ;;  %v519_v39 = vld [vmem:[%s1672_s5 + $0x38] sm:$0xff] }
 0x89e   : > { %v407_v44 = vadd.f32 %v406_v40, %v400_v29 }
 0x8a0   : > { %v408_v45 = vsub.f32 %v407_v44, %v379_v19 }
 0x8a2   : > { %v435_v49 = vrot.slane %v408_v45, %v428_v38  ;;  %v481_v15 = vrot.slane %v408_v45, %v474_v8  ;;  %v518_v38 = vld [vmem:[%s1672_s5 + $0x30] sm:$0xff] }
 0x8a4   : > { %v437_v50 = vsub.f32 %v431_v48, %v435_v49  ;;  %v436_v52 = vsub.f32 %v430_v47, %v435_v49 }
 0x8a6   : > { %v443_v53 = vmul.f32 %v441_v51, %v437_v50  ;;  %v442_v54 = vmul.f32 %v441_v51, %v436_v52 }
 0x8a8   : > { %v445_v55 = vmax.f32 %v443_v53, 0.0  ;;  %v444_v56 = vmax.f32 %v442_v54, 0.0 }
 0x8aa   : > { %v447_v57 = vmin.f32 %v445_v55, 1.0  ;;  %v446_v58 = vmin.f32 %v444_v56, 1.0 }
 0x8ac   : > { %v452_v59 = vsel %vm448_vm8, %v447_v57, 0.0  ;;  %v449_v60 = vsel %vm448_vm8, %v446_v58, 0.0 }
 0x8ad   : > { %453 = vadd.xlane.f32.xlu0 %v452_v59  ;;  %450 = vadd.xlane.f32.xlu1 %v449_v60 }
 0x8b1   : > { %469 = vadd.xlane.f32.xlu0 %v468_v61 }
 0x936   : > { %v454_v0 = vpop.xlane.xlu0 %453  ;;  %v451_v1 = vpop.xlane.xlu1 %450 }
 0x937   : > { %v456_v2 = vmin.f32 %v454_v0, 16.0  ;;  %v455_v4 = vmin.f32 %v451_v1, 16.0 }
 0x939   : > { %v458_v5 = vmul.f32 0.9375, %v456_v2  ;;  %v457_v6 = vmul.f32 0.9375, %v455_v4 }
 0x93a   : > { %v470_v7 = vpop.xlane.xlu0 %469 }
 0x93b   : > { %v459_v9 = vsub.f32 %v457_v6, %v411_v3  ;;  %v471_v10 = vmul.f32 0.0625, %v470_v7  ;;  %v460_v11 = vsub.f32 %v458_v5, %v411_v3 }
 0x93d   : > { %v461_v12 = vand.u32 2147483647, %v459_v9  ;;  %v475_v13 = vrot.slane %v471_v10, %v474_v8  ;;  %v462_v14 = vand.u32 2147483647, %v460_v11 }
 0x93f   : > { %v463_v16 = vsub.f32 1.0, %v461_v12  ;;  %v476_v17 = vmul.f32 %v475_v13, %v424_v41  ;;  %v477_v18 = vmul.f32 %v475_v13, %v425_v42  ;;  %v464_v19 = vsub.f32 1.0, %v462_v14 }
 0x941   : > { %v466_v20 = vmax.f32 %v464_v19, 0.0  ;;  %v483_v21 = vsub.f32 %v477_v18, %v481_v15  ;;  %v482_v23 = vsub.f32 %v476_v17, %v481_v15  ;;  %v465_v24 = vmax.f32 %v463_v16, 0.0 }
 0x943   : > { %1183 = vmatprep.subr.msk.mxu0 %vm448_vm8, %v466_v20  ;;  %v489_v25 = vmul.f32 %v487_v22, %v483_v21  ;;  %v488_v26 = vmul.f32 %v487_v22, %v482_v23 }
 0x944   : > { %1184 = vmatpush3.xpose.msk.msra.mxu0 %vm448_vm8, %v466_v20 }
 0x945   : > { %1185 = vmatprep.subr.msk.mxu0 %vm448_vm8, %v465_v24  ;;  %v491_v27 = vmax.f32 %v489_v25, 0.0  ;;  %v490_v28 = vmax.f32 %v488_v26, 0.0 }
 0x947   : > { %v493_v29 = vmin.f32 %v491_v27, 1.0  ;;  %v492_v30 = vmin.f32 %v490_v28, 1.0 }
 0x948   : > { %1186 = vmatpush3.xpose.msk.msra.mxu0 %vm448_vm8, %v465_v24 }
 0x949   : > { %v497_v32 = vsel %vm448_vm8, %v493_v29, 0.0  ;;  %v494_v33 = vsel %vm448_vm8, %v492_v30, 0.0 }
 0x94a   : > { %498 = vadd.xlane.f32.xlu0 %v497_v32  ;;  %495 = vadd.xlane.f32.xlu1 %v494_v33 }
 0x94b   : > { %1188 = vmatmul.mubr.msk.f32.vlgmr.msra.gmra.mxu0 %vm448_vm8, %v513_v31 }
 0x94c   : > { %1190 = vmatprep.mubr.msk.f32.mxu0 %vm448_vm8, %v514_v34 }
 0x94f   : > { %1191 = vmatmul.mubr.msk.f32.gmra.mxu0 %vm448_vm8, %v515_v35 }
 0x950   : > { %1193 = vmatprep.mubr.msk.f32.mxu0 %vm448_vm8, %v516_v36 }
 0x953   : > { %1194 = vmatmul.mubr.msk.f32.gmra.mxu0 %vm448_vm8, %v517_v37 }
 0x954   : > { %1196 = vmatprep.mubr.msk.f32.mxu0 %vm448_vm8, %v518_v38 }
 0x957   : > { %1197 = vmatmul.mubr.msk.f32.gmra.mxu0 %vm448_vm8, %v519_v39 }
 0x9d3   : > { %v496_v40 = vpop.xlane.xlu1 %495  ;;  %v499_v47 = vpop.xlane.xlu0 %498 }
 0x9d4   : > { %v500_v41 = vmin.f32 %v496_v40, 16.0  ;;  %v501_v48 = vmin.f32 %v499_v47, 16.0 }
 0x9d6   : > { %v502_v42 = vmul.f32 0.9375, %v500_v41  ;;  %v503_v49 = vmul.f32 0.9375, %v501_v48 }
 0x9d8   : > { %v504_v43 = vsub.f32 %v502_v42, %v411_v3  ;;  %v505_v50 = vsub.f32 %v503_v49, %v411_v3 }
 0x9da   : > { %v506_v44 = vand.u32 2147483647, %v504_v43  ;;  %v507_v51 = vand.u32 2147483647, %v505_v50 }
 0x9dc   : > { %v508_v45 = vsub.f32 1.0, %v506_v44  ;;  %v509_v52 = vsub.f32 1.0, %v507_v51 }
 0x9de   : > { %v510_v46 = vmax.f32 %v508_v45, 0.0  ;;  %v511_v55 = vmax.f32 %v509_v52, 0.0 }
 0x9e0   : > { %1203 = vmatprep.mubr.msk.f32.mxu1 %vm448_vm8, %v510_v46 }
 0xa0b   : > { %v1189_v53 = vpop.f32.mrf.mxu0 }
 0xa0c   : > { %1199 = vmatprep.subr.mxu1 %v1189_v53 }
 0xa0d   : > { %v616_v54 = vpop.f32.mrf.mxu0  ;;  %1200 = vmatpush3.msra.mxu1 %v1189_v53 }
 0xa0e   : > { %1201 = vmatprep.subr.mxu1 %v616_v54 }
 0xa0f   : > { %v1192_v56 = vpop.f32.mrf.mxu0  ;;  %1202 = vmatpush3.msra.mxu1 %v616_v54 }
 0xa10   : > { %1204 = vmatmul.mubr.msk.f32.vlgmr.msra.gmra.mxu1 %vm448_vm8, %v511_v55  ;;  %1206 = vmatprep.subr.mxu1 %v1192_v56 }
 0xa11   : > { %v626_v57 = vpop.f32.mrf.mxu0  ;;  %1207 = vmatpush3.msra.mxu1 %v1192_v56  ;;  %1210 = vmatprep.mubr.msk.f32.mxu1 %vm448_vm8, %v510_v46 }
 0xa12   : > { %1208 = vmatprep.subr.mxu1 %v626_v57 }
 0xa13   : > { %v1195_v58 = vpop.f32.mrf.mxu0  ;;  %1209 = vmatpush3.msra.mxu1 %v626_v57 }
 0xa14   : > { %1211 = vmatmul.mubr.msk.f32.vlgmr.msra.gmra.mxu1 %vm448_vm8, %v511_v55  ;;  %1213 = vmatprep.subr.mxu1 %v1195_v58 }
 0xa15   : > { %v636_v59 = vpop.f32.mrf.mxu0  ;;  %1214 = vmatpush3.msra.mxu1 %v1195_v58  ;;  %1217 = vmatprep.mubr.msk.f32.mxu1 %vm448_vm8, %v510_v46 }
 0xa16   : > { %1215 = vmatprep.subr.mxu1 %v636_v59 }
 0xa17   : > { %v1198_v60 = vpop.f32.mrf.mxu0  ;;  %1216 = vmatpush3.msra.mxu1 %v636_v59 }
 0xa18   : > { %1218 = vmatmul.mubr.msk.f32.vlgmr.msra.gmra.mxu1 %vm448_vm8, %v511_v55  ;;  %1220 = vmatprep.subr.mxu1 %v1198_v60 }
 0xa19   : > { %v646_v61 = vpop.f32.mrf.mxu0  ;;  %1221 = vmatpush3.msra.mxu1 %v1198_v60  ;;  %1224 = vmatprep.mubr.msk.f32.mxu1 %vm448_vm8, %v510_v46 }
 0xa1a   : > { %1222 = vmatprep.subr.mxu1 %v646_v61 }
 0xa1b   : > { %1223 = vmatpush3.msra.mxu1 %v646_v61 }
 0xa1c   : > { %1225 = vmatmul.mubr.msk.f32.vlgmr.msra.gmra.mxu1 %vm448_vm8, %v511_v55 }
 0xad0   : > { %v1205_v62 = vpop.f32.mrf.mxu1 }
 0xad1   : > { %737 = vst.msk [vmem:[%s272_s6 + $0x8] sm:$0xff] %vm448_vm8, %v1205_v62 }
 0xad2   : > { %v727_v63 = vpop.f32.mrf.mxu1 }
 0xad3   : > { %736 = vst.msk [vmem:[%s272_s6] sm:$0xff] %vm448_vm8, %v727_v63 }
 0xad4   : > { %v1212_v0 = vpop.f32.mrf.mxu1 }
 0xad5   : > { %1141 = vst.msk [vmem:[%s272_s6 + $0x18] sm:$0xff] %vm448_vm8, %v1212_v0 }
 0xad6   : > { %v804_v1 = vpop.f32.mrf.mxu1 }
 0xad7   : > { %1140 = vst.msk [vmem:[%s272_s6 + $0x10] sm:$0xff] %vm448_vm8, %v804_v1 }
 0xad8   : > { %v1219_v2 = vpop.f32.mrf.mxu1 }
 0xad9   : > { %1145 = vst.msk [vmem:[%s272_s6 + $0x28] sm:$0xff] %vm448_vm8, %v1219_v2 }
 0xada   : > { %v882_v3 = vpop.f32.mrf.mxu1 }
 0xadb   : > { %1144 = vst.msk [vmem:[%s272_s6 + $0x20] sm:$0xff] %vm448_vm8, %v882_v3 }
 0xadc   : > { %v1226_v4 = vpop.f32.mrf.mxu1 }
 0xadd   : > { %1149 = vst.msk [vmem:[%s272_s6 + $0x38] sm:$0xff] %vm448_vm8, %v1226_v4 }
 0xade   : > { %v960_v5 = vpop.f32.mrf.mxu1 }
 0xadf   : > { %1148 = vst.msk [vmem:[%s272_s6 + $0x30] sm:$0xff] %vm448_vm8, %v960_v5 }
 0xae0   : > { %1407 = shalt.err (!%p1404_p6)
}
 0xae1   : > { %s1408_s20 = scalar_lea.hbm %s1719_s9, 1024  ;;  %s1412_s18 = scalar_lea.hbm %s1772_s3, 2048 }
 0xae2   : > { %p1409_p7 = scmp.ne.s32.totalorder %s1719_s9, %s1408_s20  ;;  %p1413_p2 = scmp.lt.s32.totalorder %s1719_s9, %s1772_s3 }
 0xae3   : > { %p1414_p8 = scmp.lt.s32.totalorder %s1412_s18, %s1408_s20 }
 0xae4   : > { %p1410_p10 = pnand %p1409_p7, %p1566_p9 }
 0xae5   : > { %p1415_p0 = por %p1414_p8, %p1413_p2 }
 0xae6   : > { %p1411_p13 = pneg %p1410_p10 }
 0xae8   : > { %p1416_p1 = pnand %p1415_p0, %p1411_p13 }
 0xaea   : > { %1419 = shalt.err (!%p1416_p1)
}
 0xaeb   : > { %s1490_s29 = smov 128  }
 0xaec   : > { %1233 = dma.vmem_to_hbm [thread:$0]  (%p1566_p9), %s1713_s19, 1024, %s1719_s9, %s973_s8, %s1490_s29, %s1490_s29, %s1488_s23  }
 0xaed PF: > { %s1004_s5 = sand.u32 1, %s1458_s12   ;;  %p1246_p3 = pnand %p1116_p12, %p1573_p11 }
 0xaee   : > { %s1005_s6 = scalar_lea.sflag [#allocation4], %s1004_s5 }
 0xaef   : > { %p1247_p4 = pneg %p1246_p3 }
 0xaf1   : > { %1453 = dma.done.wait (%p1247_p4), %s1005_s6, 1024  }
 0xaf2   : > { %1455 = vsyncadd (%p1247_p4), %s1005_s6, 4294966272  ;;  %s22_s17 = sadd.s32 1, %s1478_s17   ;;  %s1786_s25 = sld [smem:[#allocation12_spill]] }
 0xaf3   : > { %p19_p5 = scmp.ge.s32.totalorder %s22_s17, 4   ;;  %s1787_s12 = smov %s1462_s13 }
 0xaf4   : > { %s1788_s13 = smov %s1466_s14  ;;  %s1789_s14 = smov %s1571_s26 }
 0xaf5   : > { %s1790_s15 = smov %s1474_s16  ;;  %21 = sbr.rel (!%p19_p5) target bundleno = 11 (0xb), region = 104 }
 0xaf8   : > { %s1791_s16 = smov %s1786_s25 }
 0xafa   :  { %1010 = vsyncpa [#allocation3], 1 }
 0xafb   :  { %1012 = vsyncpa [#allocation3 + $0x1], 1 }
 0xafc   :  { %1013 = vsyncpa [#allocation6], 1 }
 0xafd   :  { %1015 = vsyncpa [#allocation6 + $0x1], 1 }
 0xafe   :  { %1016 = vsyncpa [#allocation4], 1 }
 0xaff   :  { %1018 = vsyncpa [#allocation4 + $0x1], 1 }

</bundles_post_ra>
